<compile_context>
chip_gen: v6e
topology: v6e:2x2x1
jax: 0.10.0
libtpu: 0.0.40
codegen_flags: <defaults>
</compile_context>

<pallas_src>
import functools

import jax
import jax.numpy as jnp
from jax import lax
from jax.experimental import pallas as pl
from jax.experimental.pallas import tpu as pltpu

EPS = 1e-5  # nn.BatchNorm1d default eps


# ----------------------------------------------------------------------------- kernel
def _gbn_kernel(x_ref, gamma_ref, beta_ref, o_ref):
    # x_ref: (G, rows, C) — G ghost batches, each flattened over (vbs, L).
    n_rows = x_ref.shape[1]
    inv_n = 1.0 / n_rows

    # Pass 1: single-pass per-(ghost batch, channel) statistics in f32, pivoted
    # on row 0 of each ghost batch to avoid E[x^2]-E[x]^2 cancellation.
    pivot = x_ref[:, 0:1, :].astype(jnp.float32)            # (G, 1, C)
    xc = x_ref[...].astype(jnp.float32) - pivot             # (G, rows, C)
    s1 = jnp.sum(xc, axis=1, keepdims=True)                 # (G, 1, C)
    s2 = jnp.sum(xc * xc, axis=1, keepdims=True)            # (G, 1, C)
    mean_c = s1 * inv_n
    var = jnp.maximum(s2 * inv_n - mean_c * mean_c, 0.0)    # biased (training) var
    inv_std = lax.rsqrt(var + EPS)

    gamma = gamma_ref[...].reshape(1, 1, -1).astype(jnp.float32)
    beta = beta_ref[...].reshape(1, 1, -1).astype(jnp.float32)
    mean = pivot + mean_c
    scale = gamma * inv_std                                  # (G, 1, C)
    shift = beta - mean * scale                              # (G, 1, C)

    # Pass 2: re-read x from VMEM (vld is cheap) rather than keeping a
    # tile-sized f32 temporary live across both passes.
    o_ref[...] = (x_ref[...].astype(jnp.float32) * scale + shift).astype(o_ref.dtype)


# ----------------------------------------------------------------------------- helpers
def _vmem_capacity_bytes():
    try:
        cap = getattr(pltpu.get_tpu_info(), "vmem_capacity_bytes", None)
        if cap:
            return int(cap)
    except Exception:
        pass
    return 128 << 20  # v5e / v6e default


def _choose_group(num_chunks, chunk_bytes, per_chunk_cost, budget_bytes, two_cores):
    """Largest ghost-batch group whose VMEM footprint fits the budget.

    Extra grid steps are only forced where they pay: a 2-way split on v7x so
    both TensorCores get work, and a mild >=3-step preference for DMA/compute
    pipelining — but never below ~2 MiB native tiles.
    """
    g = max(1, int(budget_bytes // max(per_chunk_cost, 1)))
    g = min(g, num_chunks)
    if num_chunks >= 3:
        g_pipe = pl.cdiv(num_chunks, 3)
        if g_pipe * chunk_bytes >= (2 << 20):
            g = min(g, g_pipe)
    if two_cores and num_chunks >= 2:
        g = min(g, pl.cdiv(num_chunks, 2))
    return int(g)


def _gbn_jnp(x3, gamma, beta, vbs):
    """Plain-jnp ghost batch norm on (B, L, C); handles ragged last chunk."""
    gamma = gamma.astype(jnp.float32).reshape(1, 1, -1)
    beta = beta.astype(jnp.float32).reshape(1, 1, -1)
    B = x3.shape[0]
    outs = []
    for s in range(0, B, vbs):
        c = x3[s:s + vbs].astype(jnp.float32)
        mean = jnp.mean(c, axis=(0, 1), keepdims=True)
        var = jnp.mean((c - mean) ** 2, axis=(0, 1), keepdims=True)
        y = gamma * (c - mean) * lax.rsqrt(var + EPS) + beta
        outs.append(y.astype(x3.dtype))
    return outs[0] if len(outs) == 1 else jnp.concatenate(outs, axis=0)


def _gbn_pallas(x3, gamma, beta, vbs):
    """Pallas path; requires x3.shape[0] % vbs == 0."""
    B, L, C = x3.shape
    num_chunks = B // vbs
    rows = vbs * L                                   # rows per ghost batch per channel

    xr = x3.reshape(num_chunks, rows, C)
    gamma2 = gamma.reshape(1, C).astype(jnp.float32)
    beta2 = beta.reshape(1, C).astype(jnp.float32)

    itemsize = jnp.dtype(xr.dtype).itemsize
    chunk_bytes = rows * C * itemsize
    chunk_f32_bytes = rows * C * 4
    # Double-buffered input + output tiles (auto pipelining) plus ~2 tile-sized
    # f32 temporaries inside the kernel body (stats pass, pre-cast output).
    per_chunk_cost = 4 * chunk_bytes + 2 * chunk_f32_bytes

    vmem_cap = _vmem_capacity_bytes()
    two_cores = vmem_cap < (100 << 20)               # v7x: 64 MiB VMEM/TC, 2 TCs/chip
    budget = min((vmem_cap * 3) // 4, 96 << 20)      # ~96 MiB v5e/v6e, ~48 MiB v7x

    G = _choose_group(num_chunks, chunk_bytes, per_chunk_cost,
                      budget - (4 << 20), two_cores)
    grid = (pl.cdiv(num_chunks, G),)                 # ragged last tile is OK: stats
                                                     # reduce only over axis=1 and
                                                     # OOB writes are masked.
    vmem_limit = int(min(max(G * per_chunk_cost + (4 << 20), 32 << 20), budget))

    out = pl.pallas_call(
        _gbn_kernel,
        out_shape=jax.ShapeDtypeStruct((num_chunks, rows, C), xr.dtype),
        grid_spec=pltpu.PrefetchScalarGridSpec(
            num_scalar_prefetch=0,
            grid=grid,
            in_specs=[
                pl.BlockSpec((G, rows, C), lambda i: (i, 0, 0)),
                pl.BlockSpec((1, C), lambda i: (0, 0)),
                pl.BlockSpec((1, C), lambda i: (0, 0)),
            ],
            out_specs=pl.BlockSpec((G, rows, C), lambda i: (i, 0, 0)),
        ),
        compiler_params=pltpu.CompilerParams(
            dimension_semantics=("parallel",),
            vmem_limit_bytes=vmem_limit,
        ),
    )(xr, gamma2, beta2)

    return out.reshape(B, L, C)


# ----------------------------------------------------------------------------- public API
@functools.partial(jax.jit,
                   static_argnames=("virtual_batch_size", "training", "min_kernel_bytes"))
def ghost_batch_norm_1d(x, gamma, beta, *, virtual_batch_size=8, training=True,
                        min_kernel_bytes=2 << 20):
    """Ghost batch norm forward (training-mode statistics).

    x: (B, C) or (B, L, C) -- matches the PyTorch module's input convention.
    gamma, beta: (C,) affine parameters of the inner BatchNorm1d.
    """
    # Same early-return semantics as the PyTorch module's forward.
    if virtual_batch_size == -1 or (training and x.shape[0] == 1):
        return x

    squeeze_seq = x.ndim == 2
    x3 = x[:, None, :] if squeeze_seq else x          # (B, L, C)
    B, L, C = x3.shape
    vbs = virtual_batch_size

    total_bytes = x3.size * jnp.dtype(x3.dtype).itemsize
    num_full = B // vbs

    if num_full == 0 or total_bytes < min_kernel_bytes:
        # Small-problem fallback: launch/pipeline fixed cost dominates and XLA
        # fusion wins on every generation.
        out = _gbn_jnp(x3, gamma, beta, vbs)
    else:
        head = num_full * vbs
        out_head = _gbn_pallas(x3[:head], gamma, beta, vbs)
        if head == B:
            out = out_head
        else:
            # Ragged last ghost batch (B % vbs != 0): matches torch.split()'s
            # short final chunk via the plain-jnp path.
            out_tail = _gbn_jnp(x3[head:], gamma, beta, vbs)
            out = jnp.concatenate([out_head, out_tail], axis=0)

    return out[:, 0, :] if squeeze_seq else out


# ----------------------------------------------------------------------------- reference & test
def _reference(x, gamma, beta, vbs):
    # Pure-JAX reference replicating the PyTorch forward (training mode).
    squeeze = x.ndim == 2
    x3 = x[:, None, :] if squeeze else x
    outs = []
    for s in range(0, x3.shape[0], vbs):
        chunk = x3[s:s + vbs]
        mean = chunk.mean(axis=(0, 1), keepdims=True)
        var = ((chunk - mean) ** 2).mean(axis=(0, 1), keepdims=True)
        outs.append(gamma * (chunk - mean) / jnp.sqrt(var + EPS) + beta)
    out = jnp.concatenate(outs, axis=0)
    return out[:, 0, :] if squeeze else out


if __name__ == "__main__":
    key = jax.random.PRNGKey(0)
    k_x3, k_x2, k_xr, k_g, k_b = jax.random.split(key, 5)

    input_size = 32          # C (hidden)
    seq_len = 8              # L
    batch = 16               # B -> two ghost batches of 8
    vbs = 8

    gamma = 1.0 + 0.1 * jax.random.normal(k_g, (input_size,), dtype=jnp.float32)
    beta = 0.1 * jax.random.normal(k_b, (input_size,), dtype=jnp.float32)

    # 3D case: (batch, seq, hidden).  min_kernel_bytes=0 forces the Pallas path
    # at these small test shapes (the default would take the jnp fallback).
    x3 = jax.random.normal(k_x3, (batch, seq_len, input_size), dtype=jnp.float32)
    y3 = ghost_batch_norm_1d(x3, gamma, beta, virtual_batch_size=vbs, min_kernel_bytes=0)
    y3 = jax.block_until_ready(y3)
    ref3 = _reference(x3, gamma, beta, vbs)
    assert y3.shape == x3.shape and y3.dtype == x3.dtype
    assert jnp.allclose(y3, ref3, atol=2e-5, rtol=1e-5)

    # 2D case: (batch, hidden).
    x2 = jax.random.normal(k_x2, (batch, input_size), dtype=jnp.float32)
    y2 = ghost_batch_norm_1d(x2, gamma, beta, virtual_batch_size=vbs, min_kernel_bytes=0)
    y2 = jax.block_until_ready(y2)
    ref2 = _reference(x2, gamma, beta, vbs)
    assert y2.shape == x2.shape and y2.dtype == x2.dtype
    assert jnp.allclose(y2, ref2, atol=2e-5, rtol=1e-5)

    # Ragged batch (B % vbs != 0): head via the kernel, short tail via jnp.
    xr = jax.random.normal(k_xr, (batch + 3, seq_len, input_size), dtype=jnp.float32)
    yr = ghost_batch_norm_1d(xr, gamma, beta, virtual_batch_size=vbs, min_kernel_bytes=0)
    yr = jax.block_until_ready(yr)
    refr = _reference(xr, gamma, beta, vbs)
    assert yr.shape == xr.shape and yr.dtype == xr.dtype
    assert jnp.allclose(yr, refr, atol=2e-5, rtol=1e-5)

    print("KERNEL_OK")
</pallas_src>

<mosaic_0001>
module attributes {stable_mosaic.version = 11 : i64} {
  func.func @_gbn_kernel(%arg0: i32, %arg1: memref<2x64x32xf32, #tpu.memory_space<vmem>>, %arg2: memref<1x32xf32, #tpu.memory_space<vmem>>, %arg3: memref<1x32xf32, #tpu.memory_space<vmem>>, %arg4: memref<2x64x32xf32, #tpu.memory_space<vmem>>) attributes {dimension_semantics = [#tpu.dimension_semantics<parallel>], iteration_bounds = array<i64: 1>, scalar_prefetch = 0 : i64, scratch_operands = 0 : i64, tpu.core_type = #tpu.core_type<tc>, window_params = [{transform_indices = @transform_0, window_bounds = array<i64: 2, 64, 32>}, {pipeline_mode = #tpu.pipeline_mode<synchronous>, transform_indices = @transform_1, window_bounds = array<i64: 1, 32>}, {pipeline_mode = #tpu.pipeline_mode<synchronous>, transform_indices = @transform_2, window_bounds = array<i64: 1, 32>}, {transform_indices = @transform_3, window_bounds = array<i64: 2, 64, 32>}]} {
    %c0 = arith.constant 0 : index
    %c0_0 = arith.constant 0 : index
    %c0_1 = arith.constant 0 : index
    %0 = vector.load %arg1[%c0, %c0_0, %c0_1] : memref<2x64x32xf32, #tpu.memory_space<vmem>>, vector<2x1x32xf32>
    %c0_2 = arith.constant 0 : index
    %c0_3 = arith.constant 0 : index
    %c0_4 = arith.constant 0 : index
    %1 = vector.load %arg1[%c0_2, %c0_3, %c0_4] : memref<2x64x32xf32, #tpu.memory_space<vmem>>, vector<2x64x32xf32>
    %2 = vector.broadcast %0 : vector<2x1x32xf32> to vector<2x64x32xf32>
    %3 = arith.subf %1, %2 : vector<2x64x32xf32>
    %cst = arith.constant dense<0.000000e+00> : vector<2x32xf32>
    %4 = vector.multi_reduction <add>, %3, %cst [1] : vector<2x64x32xf32> to vector<2x32xf32>
    %5 = vector.shape_cast %4 : vector<2x32xf32> to vector<2x1x32xf32>
    %6 = arith.mulf %3, %3 : vector<2x64x32xf32>
    %cst_5 = arith.constant dense<0.000000e+00> : vector<2x32xf32>
    %7 = vector.multi_reduction <add>, %6, %cst_5 [1] : vector<2x64x32xf32> to vector<2x32xf32>
    %8 = vector.shape_cast %7 : vector<2x32xf32> to vector<2x1x32xf32>
    %cst_6 = arith.constant 1.562500e-02 : f32
    %9 = vector.broadcast %cst_6 : f32 to vector<2x1x32xf32>
    %10 = arith.mulf %5, %9 : vector<2x1x32xf32>
    %cst_7 = arith.constant 1.562500e-02 : f32
    %11 = vector.broadcast %cst_7 : f32 to vector<2x1x32xf32>
    %12 = arith.mulf %8, %11 : vector<2x1x32xf32>
    %13 = arith.mulf %10, %10 : vector<2x1x32xf32>
    %14 = arith.subf %12, %13 : vector<2x1x32xf32>
    %cst_8 = arith.constant 0.000000e+00 : f32
    %15 = vector.broadcast %cst_8 : f32 to vector<2x1x32xf32>
    %16 = arith.maximumf %14, %15 : vector<2x1x32xf32>
    %cst_9 = arith.constant 9.99999974E-6 : f32
    %17 = vector.broadcast %cst_9 : f32 to vector<2x1x32xf32>
    %18 = arith.addf %16, %17 : vector<2x1x32xf32>
    %19 = math.rsqrt %18 : vector<2x1x32xf32>
    %c0_10 = arith.constant 0 : index
    %c0_11 = arith.constant 0 : index
    %20 = vector.load %arg2[%c0_10, %c0_11] : memref<1x32xf32, #tpu.memory_space<vmem>>, vector<1x32xf32>
    %21 = vector.shape_cast %20 : vector<1x32xf32> to vector<1x1x32xf32>
    %c0_12 = arith.constant 0 : index
    %c0_13 = arith.constant 0 : index
    %22 = vector.load %arg3[%c0_12, %c0_13] : memref<1x32xf32, #tpu.memory_space<vmem>>, vector<1x32xf32>
    %23 = vector.shape_cast %22 : vector<1x32xf32> to vector<1x1x32xf32>
    %24 = arith.addf %0, %10 : vector<2x1x32xf32>
    %25 = vector.broadcast %21 : vector<1x1x32xf32> to vector<2x1x32xf32>
    %26 = arith.mulf %25, %19 : vector<2x1x32xf32>
    %27 = arith.mulf %24, %26 : vector<2x1x32xf32>
    %28 = vector.broadcast %23 : vector<1x1x32xf32> to vector<2x1x32xf32>
    %29 = arith.subf %28, %27 : vector<2x1x32xf32>
    %c0_14 = arith.constant 0 : index
    %c0_15 = arith.constant 0 : index
    %c0_16 = arith.constant 0 : index
    %30 = vector.load %arg1[%c0_14, %c0_15, %c0_16] : memref<2x64x32xf32, #tpu.memory_space<vmem>>, vector<2x64x32xf32>
    %31 = vector.broadcast %26 : vector<2x1x32xf32> to vector<2x64x32xf32>
    %32 = arith.mulf %30, %31 : vector<2x64x32xf32>
    %33 = vector.broadcast %29 : vector<2x1x32xf32> to vector<2x64x32xf32>
    %34 = arith.addf %32, %33 : vector<2x64x32xf32>
    %c0_17 = arith.constant 0 : index
    %c0_18 = arith.constant 0 : index
    %c0_19 = arith.constant 0 : index
    %35 = vector.load %arg4[%c0_17, %c0_18, %c0_19] : memref<2x64x32xf32, #tpu.memory_space<vmem>>, vector<2x64x32xf32>
    tpu.vector_store %arg4[%c0_17, %c0_18, %c0_19], %34 {strides = array<i32>} : memref<2x64x32xf32, #tpu.memory_space<vmem>>, vector<2x64x32xf32>,
    return
  }
  func.func @transform_0(%arg0: i32) -> (i32, i32, i32) {
    %c0_i32 = arith.constant 0 : i32
    %c0_i32_0 = arith.constant 0 : i32
    %c0_i32_1 = arith.constant 0 : i32
    return %arg0, %c0_i32, %c0_i32_0 : i32, i32, i32
  }
  func.func @transform_1(%arg0: i32) -> (i32, i32) {
    %c0_i32 = arith.constant 0 : i32
    %c0_i32_0 = arith.constant 0 : i32
    %c0_i32_1 = arith.constant 0 : i32
    return %c0_i32, %c0_i32_0 : i32, i32
  }
  func.func @transform_2(%arg0: i32) -> (i32, i32) {
    %c0_i32 = arith.constant 0 : i32
    %c0_i32_0 = arith.constant 0 : i32
    %c0_i32_1 = arith.constant 0 : i32
    return %c0_i32, %c0_i32_0 : i32, i32
  }
  func.func @transform_3(%arg0: i32) -> (i32, i32, i32) {
    %c0_i32 = arith.constant 0 : i32
    %c0_i32_0 = arith.constant 0 : i32
    %c0_i32_1 = arith.constant 0 : i32
    return %arg0, %c0_i32, %c0_i32_0 : i32, i32, i32
  }
}

</mosaic_0001>

<bundles_post_ra>
// kernel: ghost_batch_norm_1d.1
= control target key start
LH: loop header
LB: loop body
LE: loop exit
PB: predicated region body
PF: predicated region fallthrough
CT: control target
= control target key end

     0   :  { %8 = vsyncpa [#allocation3], 0  ;;  %s507_s0 = inlined_call_operand.hbm [shape: f32[2,64,32], index: 0, kind: input, shape index: {}]   ;;  %s508_s1 = inlined_call_operand.vmem [shape: f32[1,32], index: 1, kind: input, shape index: {}]   ;;  %s509_s2 = inlined_call_operand.vmem [shape: f32[1,32], index: 2, kind: input, shape index: {}]   ;;  %s510_s3 = inlined_call_operand.hbm [shape: f32[2,64,32], index: 3, kind: output, shape index: {}]  }
   0x1   :  { %9 = vsyncpa [#allocation4], 0  ;;  %s337_s12 = smov [#allocation2]  }
   0x2   :  { %s15_s13 = sshll.u32 %s337_s12, 4  ;;  %s16_s13 = int_to_ptr.vmem [resolvable:$true] %s15_s13 }
   0x3   :  { %s301_s14 = scalar_lea.vmem %s16_s13, 2048  ;;  %p306_p1 = scmp.lt.s32.totalorder %s16_s13, %s16_s13 }
   0x4   :  { %p302_p0 = scmp.ne.s32.totalorder %s16_s13, %s301_s14  ;;  %p307_p2 = scmp.lt.s32.totalorder %s301_s14, %s301_s14 }
   0x6   :  { %p308_p3 = por %p307_p2, %p306_p1 }
   0x8   :  { %p309_p4 = pnand %p308_p3, %p302_p0 }
   0xa   :  { %312 = shalt.err (!%p309_p4)
}
   0xb   :  { %s338_s15 = smov 128   ;;  %s339_s16 = smov 8  }
   0xc   :  { %21 = dma.hbm_to_vmem [thread:$0]  %s507_s0, 2048, %s16_s13, [#allocation3], %s338_s15, %s338_s15, %s339_s16  }
   0xd   :  { %333 = dma.done.wait [#allocation3], 2048  }
   0xe   :  { %334 = vsyncadd [#allocation3], 4294965248  ;;  %v47_v0 = vlaneseq  ;;  %v369_v3 = vld [vmem:[#allocation2] sm:$0x1]  ;;  %v373_v5 = vld [vmem:[#allocation2 + $0x8] sm:$0xff]  ;;  %vm71_vm0 = vcmask 261120  }
   0xf   :  { %v371_v4 = vld [vmem:[#allocation2] sm:$0xff]  ;;  %v375_v6 = vld [vmem:[#allocation2 + $0x10] sm:$0xff]  ;;  %v377_v7 = vld [vmem:[#allocation2 + $0x18] sm:$0xff] }
  0x10   :  { %v48_v1 = vshrl.u32 %v47_v0, 7  ;;  %v381_v9 = vld [vmem:[#allocation2 + $0x20] sm:$0xff]  ;;  %v383_v10 = vld [vmem:[#allocation2 + $0x28] sm:$0xff]  ;;  %v389_v15 = vld [vmem:[#allocation2 + $0x30] sm:$0xff] }
  0x11   :  { %v391_v16 = vld [vmem:[#allocation2 + $0x38] sm:$0xff]  ;;  %v404_v35 = vld [vmem:[#allocation2 + $0x40] sm:$0x1]  ;;  %v411_v43 = vld [vmem:[#allocation2 + $0x48] sm:$0xff] }
  0x12   :  { %v367_v2 = vsub.s32 0, %v48_v1  ;;  %v409_v42 = vld [vmem:[#allocation2 + $0x40] sm:$0xff]  ;;  %v413_v47 = vld [vmem:[#allocation2 + $0x50] sm:$0xff]  ;;  %v415_v48 = vld [vmem:[#allocation2 + $0x58] sm:$0xff] }
  0x13   :  { %v422_v55 = vld [vmem:[#allocation2 + $0x60] sm:$0xff]  ;;  %v427_v60 = vld [vmem:[#allocation2 + $0x68] sm:$0xff] }
  0x14   :  { %v50_v8 = vrot.slane %v369_v3, %v367_v2  ;;  %v54_v49 = vrot.slane %v404_v35, %v367_v2 }
  0x16   :  { %v55_v11 = vsub.f32 %v371_v4, %v50_v8  ;;  %v56_v12 = vsub.f32 %v373_v5, %v50_v8  ;;  %v57_v13 = vsub.f32 %v375_v6, %v50_v8  ;;  %v58_v14 = vsub.f32 %v377_v7, %v50_v8 }
  0x17   :  { %v59_v17 = vsub.f32 %v381_v9, %v50_v8  ;;  %v60_v21 = vsub.f32 %v383_v10, %v50_v8  ;;  %v61_v27 = vsub.f32 %v389_v15, %v50_v8  ;;  %v62_v28 = vsub.f32 %v391_v16, %v50_v8  ;;  %v432_v8 = vld [vmem:[#allocation2 + $0x70] sm:$0xff] }
  0x18   :  { %v72_v18 = vsel %vm71_vm0, %v55_v11, 0.0  ;;  %v73_v19 = vsel %vm71_vm0, %v56_v12, 0.0  ;;  %v75_v20 = vsel %vm71_vm0, %v57_v13, 0.0  ;;  %v77_v23 = vsel %vm71_vm0, %v58_v14, 0.0 }
  0x19   :  { %v74_v22 = vadd.f32 %v73_v19, %v72_v18  ;;  %v114_v24 = vmul.f32 %v55_v11, %v55_v11  ;;  %v115_v25 = vmul.f32 %v56_v12, %v56_v12  ;;  %v116_v26 = vmul.f32 %v57_v13, %v57_v13  ;;  %v438_v19 = vld [vmem:[#allocation2 + $0x78] sm:$0xff] }
  0x1a   :  { %v117_v30 = vmul.f32 %v58_v14, %v58_v14  ;;  %v79_v31 = vsel %vm71_vm0, %v59_v17, 0.0  ;;  %v118_v32 = vmul.f32 %v59_v17, %v59_v17  ;;  %v81_v39 = vsel %vm71_vm0, %v60_v21, 0.0 }
  0x1b   :  { %v76_v29 = vadd.f32 %v75_v20, %v74_v22  ;;  %v130_v33 = vsel %vm71_vm0, %v114_v24, 0.0  ;;  %v131_v34 = vsel %vm71_vm0, %v115_v25, 0.0  ;;  %v133_v38 = vsel %vm71_vm0, %v116_v26, 0.0 }
  0x1c   :  { %v132_v37 = vadd.f32 %v131_v34, %v130_v33  ;;  %v119_v40 = vmul.f32 %v60_v21, %v60_v21  ;;  %v135_v41 = vsel %vm71_vm0, %v117_v30, 0.0  ;;  %v120_v45 = vmul.f32 %v61_v27, %v61_v27 }
  0x1d   :  { %v78_v36 = vadd.f32 %v77_v23, %v76_v29  ;;  %v83_v50 = vsel %vm71_vm0, %v61_v27, 0.0  ;;  %v85_v51 = vsel %vm71_vm0, %v62_v28, 0.0  ;;  %v137_v52 = vsel %vm71_vm0, %v118_v32, 0.0 }
  0x1e   :  { %v134_v46 = vadd.f32 %v133_v38, %v132_v37  ;;  %v63_v56 = vsub.f32 %v409_v42, %v54_v49  ;;  %v64_v57 = vsub.f32 %v411_v43, %v54_v49  ;;  %v121_v58 = vmul.f32 %v62_v28, %v62_v28 }
  0x1f   :  { %v80_v44 = vadd.f32 %v79_v31, %v78_v36  ;;  %v139_v59 = vsel %vm71_vm0, %v119_v40, 0.0  ;;  %v65_v61 = vsub.f32 %v413_v47, %v54_v49  ;;  %v66_v62 = vsub.f32 %v415_v48, %v54_v49 }
  0x20   :  { %v136_v54 = vadd.f32 %v135_v41, %v134_v46  ;;  %v141_v1 = vsel %vm71_vm0, %v120_v45, 0.0  ;;  %v67_v11 = vsub.f32 %v422_v55, %v54_v49  ;;  %v93_v12 = vsel %vm71_vm0, %v63_v56, 0.0 }
  0x21   :  { %v82_v53 = vadd.f32 %v81_v39, %v80_v44  ;;  %v94_v13 = vsel %vm71_vm0, %v64_v57, 0.0  ;;  %v96_v14 = vsel %vm71_vm0, %v65_v61, 0.0  ;;  %v68_v20 = vsub.f32 %v427_v60, %v54_v49 }
  0x22   :  { %v138_v0 = vadd.f32 %v137_v52, %v136_v54  ;;  %v95_v21 = vadd.f32 %v94_v13, %v93_v12  ;;  %v143_v22 = vsel %vm71_vm0, %v121_v58, 0.0  ;;  %v69_v23 = vsub.f32 %v432_v8, %v54_v49 }
  0x23   :  { %v84_v63 = vadd.f32 %v83_v50, %v82_v53  ;;  %v98_v24 = vsel %vm71_vm0, %v66_v62, 0.0  ;;  %v122_v25 = vmul.f32 %v63_v56, %v63_v56  ;;  %v123_v29 = vmul.f32 %v64_v57, %v64_v57 }
  0x24   :  { %v140_v18 = vadd.f32 %v139_v59, %v138_v0  ;;  %v97_v28 = vadd.f32 %v96_v14, %v95_v21  ;;  %v70_v30 = vsub.f32 %v438_v19, %v54_v49  ;;  %v100_v31 = vsel %vm71_vm0, %v67_v11, 0.0 }
  0x25   :  { %v86_v17 = vadd.f32 %v85_v51, %v84_v63  ;;  %v124_v32 = vmul.f32 %v65_v61, %v65_v61  ;;  %v125_v33 = vmul.f32 %v66_v62, %v66_v62  ;;  %v102_v38 = vsel %vm71_vm0, %v68_v20, 0.0 }
  0x26   :  { %v142_v27 = vadd.f32 %v141_v1, %v140_v18  ;;  %v99_v37 = vadd.f32 %v98_v24, %v97_v28  ;;  %v126_v39 = vmul.f32 %v67_v11, %v67_v11  ;;  %v151_v40 = vsel %vm71_vm0, %v122_v25, 0.0 }
  0x27   :  { %v87_v26 = vrot.slane %v86_v17, 4  ;;  %v152_v41 = vsel %vm71_vm0, %v123_v29, 0.0  ;;  %v154_v44 = vsel %vm71_vm0, %v124_v32, 0.0  ;;  %v104_v51 = vsel %vm71_vm0, %v69_v23, 0.0 }
  0x28   :  { %v144_v36 = vadd.f32 %v143_v22, %v142_v27  ;;  %v101_v50 = vadd.f32 %v100_v31, %v99_v37  ;;  %v153_v49 = vadd.f32 %v152_v41, %v151_v40  ;;  %v127_v52 = vmul.f32 %v68_v20, %v68_v20 }
  0x29   :  { %v88_v34 = vadd.f32 %v87_v26, %v86_v17  ;;  %v156_v53 = vsel %vm71_vm0, %v125_v33, 0.0  ;;  %v106_v59 = vsel %vm71_vm0, %v70_v30, 0.0  ;;  %v128_v61 = vmul.f32 %v69_v23, %v69_v23 }
  0x2a   :  { %v145_v46 = vrot.slane %v144_v36, 4  ;;  %v103_v57 = vadd.f32 %v102_v38, %v101_v50  ;;  %v155_v58 = vadd.f32 %v154_v44, %v153_v49  ;;  %v158_v62 = vsel %vm71_vm0, %v126_v39, 0.0 }
  0x2b   :  { %v89_v45 = vrot.slane %v88_v34, 2  ;;  %v129_v12 = vmul.f32 %v70_v30, %v70_v30  ;;  %v160_v13 = vsel %vm71_vm0, %v127_v52, 0.0  ;;  %v162_v21 = vsel %vm71_vm0, %v128_v61, 0.0 }
  0x2c   :  { %v146_v56 = vadd.f32 %v145_v46, %v144_v36  ;;  %v105_v1 = vadd.f32 %v104_v51, %v103_v57  ;;  %v157_v11 = vadd.f32 %v156_v53, %v155_v58 }
  0x2d   :  { %v90_v54 = vadd.f32 %v89_v45, %v88_v34  ;;  %v164_v29 = vsel %vm71_vm0, %v129_v12, 0.0 }
  0x2e   :  { %v147_v0 = vrot.slane %v146_v56, 2  ;;  %v107_v18 = vadd.f32 %v106_v59, %v105_v1  ;;  %v159_v20 = vadd.f32 %v158_v62, %v157_v11 }
  0x2f   :  { %v91_v63 = vrot.slane %v90_v54, 1 }
  0x30   :  { %v148_v17 = vadd.f32 %v147_v0, %v146_v56  ;;  %v108_v25 = vrot.slane %v107_v18, 4  ;;  %v161_v26 = vadd.f32 %v160_v13, %v159_v20  ;;  %v186_v56 = vld [vmem:[%s508_s1] sm:$0x1]  ;;  %s340_s1 = smov [#allocation5]  }
  0x31   :  { %v92_v14 = vadd.f32 %v91_v63, %v90_v54  ;;  %v187_v63 = vld [vmem:[%s509_s2] sm:$0x1]  ;;  %s273_s2 = sshll.u32 %s340_s1, 4  ;;  %s274_s2 = int_to_ptr.vmem [resolvable:$true] %s273_s2 }
  0x32   :  { %v149_v22 = vrot.slane %v148_v17, 1  ;;  %v109_v28 = vadd.f32 %v108_v25, %v107_v18  ;;  %v163_v31 = vadd.f32 %v162_v21, %v161_v26  ;;  %s313_s22 = scalar_lea.vmem %s274_s2, 2048  ;;  %p318_p6 = scmp.lt.s32.totalorder %s274_s2, %s274_s2 }
  0x33   :  { %v172_v24 = vmul.f32 0.015625, %v92_v14  ;;  %p314_p5 = scmp.ne.s32.totalorder %s274_s2, %s313_s22  ;;  %p319_p7 = scmp.lt.s32.totalorder %s313_s22, %s313_s22 }
  0x34   :  { %v150_v23 = vadd.f32 %v149_v22, %v148_v17  ;;  %v110_v30 = vrot.slane %v109_v28, 2  ;;  %v165_v33 = vadd.f32 %v164_v29, %v163_v31 }
  0x35   :  { %v176_v27 = vmul.f32 %v172_v24, %v172_v24  ;;  %v188_v58 = vadd.f32 %v172_v24, %v369_v3  ;;  %p320_p8 = por %p319_p7, %p318_p6 }
  0x36   :  { %v174_v32 = vmul.f32 0.015625, %v150_v23  ;;  %v111_v36 = vadd.f32 %v110_v30, %v109_v28  ;;  %v166_v37 = vrot.slane %v165_v33, 4 }
  0x37   :  { %p321_p9 = pnand %p320_p8, %p314_p5 }
  0x38   :  { %v178_v34 = vsub.f32 %v174_v32, %v176_v27  ;;  %v112_v39 = vrot.slane %v111_v36, 1  ;;  %v167_v40 = vadd.f32 %v166_v37, %v165_v33 }
  0x3a   :  { %v180_v38 = vmax.f32 %v178_v34, 0.0  ;;  %v113_v44 = vadd.f32 %v112_v39, %v111_v36  ;;  %v168_v45 = vrot.slane %v167_v40, 2 }
  0x3c   :  { %v182_v41 = vadd.f32 1e-05, %v180_v38  ;;  %v169_v46 = vadd.f32 %v168_v45, %v167_v40  ;;  %v173_v50 = vmul.f32 0.015625, %v113_v44 }
  0x3e   :  { %289 = vrsqrt.f32 %v182_v41  ;;  %v170_v49 = vrot.slane %v169_v46, 1  ;;  %v177_v52 = vmul.f32 %v173_v50, %v173_v50 }
  0x40   :  { %v171_v51 = vadd.f32 %v170_v49, %v169_v46 }
  0x42   :  { %v175_v53 = vmul.f32 0.015625, %v171_v51 }
  0x44   :  { %v179_v54 = vsub.f32 %v175_v53, %v177_v52 }
  0x46   :  { %v181_v57 = vmax.f32 %v179_v54, 0.0 }
  0x48   :  { %v183_v61 = vadd.f32 1e-05, %v181_v57 }
  0x4a   :  { %291 = vrsqrt.f32 %v183_v61 }
  0x4b   :  { %v290_v59 = vpop.eup %289 }
  0x4c   :  { %v190_v62 = vmul.f32 %v290_v59, %v186_v56 }
  0x4e   :  { %v192_v0 = vmul.f32 %v190_v62, %v188_v58  ;;  %v201_v1 = vrot.slane %v190_v62, %v367_v2 }
  0x50   :  { %v194_v11 = vsub.f32 %v187_v63, %v192_v0  ;;  %v208_v12 = vmul.f32 %v201_v1, %v371_v4  ;;  %v209_v13 = vmul.f32 %v201_v1, %v373_v5  ;;  %v210_v14 = vmul.f32 %v201_v1, %v375_v6 }
  0x51   :  { %v211_v3 = vmul.f32 %v201_v1, %v377_v7  ;;  %v212_v17 = vmul.f32 %v201_v1, %v381_v9  ;;  %v213_v18 = vmul.f32 %v201_v1, %v383_v10  ;;  %v214_v20 = vmul.f32 %v201_v1, %v389_v15 }
  0x52   :  { %v229_v21 = vrot.slane %v194_v11, %v367_v2  ;;  %v215_v22 = vmul.f32 %v201_v1, %v391_v16  ;;  %v189_v7 = vadd.f32 %v173_v50, %v404_v35 }
  0x54   :  { %v236_v24 = vadd.f32 %v229_v21, %v208_v12  ;;  %v237_v25 = vadd.f32 %v229_v21, %v209_v13  ;;  %v238_v26 = vadd.f32 %v229_v21, %v210_v14  ;;  %v239_v4 = vadd.f32 %v229_v21, %v211_v3 }
  0x55   :  { %v240_v23 = vadd.f32 %v229_v21, %v212_v17  ;;  %v241_v5 = vadd.f32 %v229_v21, %v213_v18  ;;  %v242_v27 = vadd.f32 %v229_v21, %v214_v20  ;;  %v243_v6 = vadd.f32 %v229_v21, %v215_v22 }
  0x56   :  { %252 = vst.msk [vmem:[#allocation5] sm:$0xff] %vm71_vm0, %v236_v24  ;;  %253 = vst.msk [vmem:[#allocation5 + $0x8] sm:$0xff] %vm71_vm0, %v237_v25 }
  0x57   :  { %254 = vst.msk [vmem:[#allocation5 + $0x10] sm:$0xff] %vm71_vm0, %v238_v26  ;;  %255 = vst.msk [vmem:[#allocation5 + $0x18] sm:$0xff] %vm71_vm0, %v239_v4  ;;  %v292_v9 = vpop.eup %291 }
  0x58   :  { %256 = vst.msk [vmem:[#allocation5 + $0x20] sm:$0xff] %vm71_vm0, %v240_v23  ;;  %257 = vst.msk [vmem:[#allocation5 + $0x28] sm:$0xff] %vm71_vm0, %v241_v5  ;;  %v191_v10 = vmul.f32 %v292_v9, %v186_v56 }
  0x59   :  { %258 = vst.msk [vmem:[#allocation5 + $0x30] sm:$0xff] %vm71_vm0, %v242_v27  ;;  %259 = vst.msk [vmem:[#allocation5 + $0x38] sm:$0xff] %vm71_vm0, %v243_v6 }
  0x5a   :  { %v193_v15 = vmul.f32 %v191_v10, %v189_v7  ;;  %v205_v16 = vrot.slane %v191_v10, %v367_v2 }
  0x5c   :  { %v195_v28 = vsub.f32 %v187_v63, %v193_v15  ;;  %v216_v29 = vmul.f32 %v205_v16, %v409_v42  ;;  %v217_v31 = vmul.f32 %v205_v16, %v411_v43  ;;  %v218_v32 = vmul.f32 %v205_v16, %v413_v47 }
  0x5d   :  { %v219_v30 = vmul.f32 %v205_v16, %v415_v48  ;;  %v220_v33 = vmul.f32 %v205_v16, %v422_v55  ;;  %v221_v34 = vmul.f32 %v205_v16, %v427_v60  ;;  %v222_v35 = vmul.f32 %v205_v16, %v432_v8 }
  0x5e   :  { %v233_v36 = vrot.slane %v195_v28, %v367_v2  ;;  %v223_v37 = vmul.f32 %v205_v16, %v438_v19 }
  0x60   :  { %v244_v38 = vadd.f32 %v233_v36, %v216_v29  ;;  %v245_v42 = vadd.f32 %v233_v36, %v217_v31  ;;  %v246_v39 = vadd.f32 %v233_v36, %v218_v32  ;;  %v247_v43 = vadd.f32 %v233_v36, %v219_v30 }
  0x61   :  { %v248_v40 = vadd.f32 %v233_v36, %v220_v33  ;;  %v249_v47 = vadd.f32 %v233_v36, %v221_v34  ;;  %v250_v41 = vadd.f32 %v233_v36, %v222_v35  ;;  %v251_v48 = vadd.f32 %v233_v36, %v223_v37 }
  0x62   :  { %260 = vst.msk [vmem:[#allocation5 + $0x40] sm:$0xff] %vm71_vm0, %v244_v38  ;;  %261 = vst.msk [vmem:[#allocation5 + $0x48] sm:$0xff] %vm71_vm0, %v245_v42 }
  0x63   :  { %262 = vst.msk [vmem:[#allocation5 + $0x50] sm:$0xff] %vm71_vm0, %v246_v39  ;;  %263 = vst.msk [vmem:[#allocation5 + $0x58] sm:$0xff] %vm71_vm0, %v247_v43 }
  0x64   :  { %264 = vst.msk [vmem:[#allocation5 + $0x60] sm:$0xff] %vm71_vm0, %v248_v40  ;;  %265 = vst.msk [vmem:[#allocation5 + $0x68] sm:$0xff] %vm71_vm0, %v249_v47 }
  0x65   :  { %266 = vst.msk [vmem:[#allocation5 + $0x70] sm:$0xff] %vm71_vm0, %v250_v41  ;;  %267 = vst.msk [vmem:[#allocation5 + $0x78] sm:$0xff] %vm71_vm0, %v251_v48 }
  0x66   :  { %324 = shalt.err (!%p321_p9)
}
  0x67   :  { %279 = dma.vmem_to_hbm [thread:$0]  %s274_s2, 2048, %s510_s3, [#allocation4], %s338_s15, %s338_s15, %s339_s16  }
  0x68   :  { %335 = dma.done.wait [#allocation4], 2048  }
  0x69   :  { %336 = vsyncadd [#allocation4], 4294965248 }
  0x6a   :  { %283 = vsyncpa [#allocation3], 1 }
  0x6b   :  { %284 = vsyncpa [#allocation4], 1 }

</bundles_post_ra>
